<compile_context>
chip_gen: v7x
topology: tpu7x:2x2x1
jax: 0.10.0
libtpu: 0.0.40
codegen_flags: <defaults>
</compile_context>

<pallas_src>
import functools
import math

import jax
import jax.numpy as jnp
from jax import lax
from jax.experimental import pallas as pl
from jax.experimental.pallas import tpu as pltpu

LN_EPS = 1e-5
MASK_NEG = -3.4028235e38            # == -torch.finfo(float32).max
VMEM_LIMIT = 64 * 1024 * 1024       # safe on v5e/v6e (128 MiB) and v7x (64 MiB physical)


# ------------------------------ helpers --------------------------------------

def _row_tile(m):
    """Largest row tile (multiple of 8) dividing m; fallback to m itself."""
    for t in (512, 256, 128, 64, 32, 16, 8):
        if m % t == 0:
            return t
    return m


def _compiler_params(*sem):
    return pltpu.CompilerParams(dimension_semantics=sem, vmem_limit_bytes=VMEM_LIMIT)


def _layernorm_f32(x, g, b):
    mean = jnp.mean(x, axis=-1, keepdims=True)
    xc = x - mean
    var = jnp.mean(xc * xc, axis=-1, keepdims=True)
    return xc * lax.rsqrt(var + LN_EPS) * g + b


# ------------------------------ Pallas kernels ------------------------------

def _ln_qkv_kernel(x_ref, g_ref, b_ref, wq_ref, wkv_ref, q_ref, kv_ref):
    """LayerNorm + fused Q and KV projections (self-attention layers)."""
    h = _layernorm_f32(x_ref[...].astype(jnp.float32), g_ref[...], b_ref[...])
    h = h.astype(jnp.bfloat16)
    q_ref[...] = jnp.dot(h, wq_ref[...],
                         preferred_element_type=jnp.float32).astype(q_ref.dtype)
    kv_ref[...] = jnp.dot(h, wkv_ref[...],
                          preferred_element_type=jnp.float32).astype(kv_ref.dtype)


def _ln_proj_kernel(x_ref, g_ref, b_ref, w_ref, o_ref):
    """LayerNorm + single projection (Q path of cross-attention layers)."""
    h = _layernorm_f32(x_ref[...].astype(jnp.float32), g_ref[...], b_ref[...])
    o_ref[...] = jnp.dot(h.astype(jnp.bfloat16), w_ref[...],
                         preferred_element_type=jnp.float32).astype(o_ref.dtype)


def _proj_kernel(x_ref, w_ref, o_ref):
    """Plain projection (KV of cross-attention: raw, un-normalized context)."""
    o_ref[...] = jnp.dot(x_ref[...].astype(jnp.bfloat16), w_ref[...],
                         preferred_element_type=jnp.float32).astype(o_ref.dtype)


def _attn_out_res_kernel(*refs, heads, head_dim, scale, has_bias):
    """Per-batch: multi-head attention + output projection + bias + residual add.

    q: (1, Nq, H*Dh) bf16, kv: (1, Nk, 2*H*Dh) bf16 (lane-dense, no head transpose),
    optional additive rel-pos bias (H, Nq, Nk) f32, additive mask (1, 1, Nk) f32,
    wo (H*Dh, D) bf16, bo (1, D) f32, residual (1, Nq, D) f32 -> out (1, Nq, D) f32.
    """
    if has_bias:
        q_ref, kv_ref, bias_ref, mask_ref, wo_ref, bo_ref, res_ref, o_ref = refs
    else:
        q_ref, kv_ref, mask_ref, wo_ref, bo_ref, res_ref, o_ref = refs
        bias_ref = None
    inner = heads * head_dim

    q_all = q_ref[0]                                   # (Nq, H*Dh)   bf16
    kv_all = kv_ref[0]                                 # (Nk, 2*H*Dh) bf16
    mask = mask_ref[0]                                 # (1, Nk)      additive f32
    wo = wo_ref[...]                                   # (H*Dh, D)    bf16
    acc = res_ref[0].astype(jnp.float32) + bo_ref[...]  # residual + out-proj bias

    for h in range(heads):                             # static unroll over heads
        lo, hi = h * head_dim, (h + 1) * head_dim
        qh = q_all[:, lo:hi]                           # (Nq, Dh) bf16
        kh = kv_all[:, lo:hi]                          # (Nk, Dh) bf16
        vh = kv_all[:, inner + lo:inner + hi]          # (Nk, Dh) bf16
        # scores: (Nq, Nk), f32 accumulate on the MXU, Nk on lanes
        s = lax.dot_general(qh, kh, (((1,), (1,)), ((), ())),
                            preferred_element_type=jnp.float32) * scale
        if has_bias:
            s = s + bias_ref[h]
        s = s + mask                                    # additive mask, no select
        m = jnp.max(s, axis=-1, keepdims=True)
        e = jnp.exp(s - m)
        p = e * pl.reciprocal(jnp.sum(e, axis=-1, keepdims=True), approx=True)
        oh = jnp.dot(p.astype(vh.dtype), vh, preferred_element_type=jnp.float32)
        # fold the per-head slice of the output projection into the accumulator
        acc = acc + jnp.dot(oh.astype(wo.dtype), wo[lo:hi, :],
                            preferred_element_type=jnp.float32)

    # TODO(synk): ld4lg Residual(dim) modeled as a plain skip connection (default config).
    o_ref[0] = acc.astype(o_ref.dtype)


def _silu_time_kernel(t_ref, wsc_ref, bsc_ref, wsh_ref, bsh_ref, sc_ref, sh_ref):
    """SiLU(time_emb) @ W + b -> (scale, shift) for the time-conditioned residual."""
    t = t_ref[...].astype(jnp.float32)
    t = t * jax.nn.sigmoid(t)                          # SiLU
    sc_ref[...] = (jnp.dot(t, wsc_ref[...], preferred_element_type=jnp.float32)
                   + bsc_ref[...]).astype(sc_ref.dtype)
    sh_ref[...] = (jnp.dot(t, wsh_ref[...], preferred_element_type=jnp.float32)
                   + bsh_ref[...]).astype(sh_ref.dtype)


def _ln_ff_time_kernel(x_ref, g_ref, b_ref, w1_ref, b1_ref, w2_ref, b2_ref,
                       sc_ref, sh_ref, o_ref):
    """LayerNorm + FeedForward (matmul->GELU->matmul) + time-conditioned residual."""
    x = x_ref[0].astype(jnp.float32)                   # (tn, D); also the residual
    h = _layernorm_f32(x, g_ref[...], b_ref[...])
    a1 = jnp.dot(h.astype(jnp.bfloat16), w1_ref[...],
                 preferred_element_type=jnp.float32) + b1_ref[...]
    # TODO(synk): PyTorch nn.GELU() default is exact (erf); tanh-approximate GELU for lowering.
    a1 = jax.nn.gelu(a1, approximate=True)
    a2 = jnp.dot(a1.astype(jnp.bfloat16), w2_ref[...],
                 preferred_element_type=jnp.float32) + b2_ref[...]
    o_ref[0] = (a2 * (sc_ref[0] + 1.0) + sh_ref[0] + x).astype(o_ref.dtype)


# ------------------------------ pallas_call wrappers -------------------------

def ln_qkv(x2, g, b, wq, wkv):
    M, D = x2.shape
    inner = wq.shape[1]
    tm = _row_tile(M)
    return pl.pallas_call(
        _ln_qkv_kernel,
        out_shape=(jax.ShapeDtypeStruct((M, inner), jnp.bfloat16),
                   jax.ShapeDtypeStruct((M, 2 * inner), jnp.bfloat16)),
        grid=(M // tm,),
        in_specs=[pl.BlockSpec((tm, D), lambda i: (i, 0)),
                  pl.BlockSpec((1, D), lambda i: (0, 0)),
                  pl.BlockSpec((1, D), lambda i: (0, 0)),
                  pl.BlockSpec((D, inner), lambda i: (0, 0)),
                  pl.BlockSpec((D, 2 * inner), lambda i: (0, 0))],
        out_specs=(pl.BlockSpec((tm, inner), lambda i: (i, 0)),
                   pl.BlockSpec((tm, 2 * inner), lambda i: (i, 0))),
        compiler_params=_compiler_params("parallel"),
    )(x2, g.reshape(1, D), b.reshape(1, D), wq, wkv)


def ln_proj(x2, g, b, w):
    M, D = x2.shape
    out_d = w.shape[1]
    tm = _row_tile(M)
    return pl.pallas_call(
        _ln_proj_kernel,
        out_shape=jax.ShapeDtypeStruct((M, out_d), jnp.bfloat16),
        grid=(M // tm,),
        in_specs=[pl.BlockSpec((tm, D), lambda i: (i, 0)),
                  pl.BlockSpec((1, D), lambda i: (0, 0)),
                  pl.BlockSpec((1, D), lambda i: (0, 0)),
                  pl.BlockSpec((D, out_d), lambda i: (0, 0))],
        out_specs=pl.BlockSpec((tm, out_d), lambda i: (i, 0)),
        compiler_params=_compiler_params("parallel"),
    )(x2, g.reshape(1, D), b.reshape(1, D), w)


def proj(x2, w):
    M, D = x2.shape
    out_d = w.shape[1]
    tm = _row_tile(M)
    return pl.pallas_call(
        _proj_kernel,
        out_shape=jax.ShapeDtypeStruct((M, out_d), jnp.bfloat16),
        grid=(M // tm,),
        in_specs=[pl.BlockSpec((tm, D), lambda i: (i, 0)),
                  pl.BlockSpec((D, out_d), lambda i: (0, 0))],
        out_specs=pl.BlockSpec((tm, out_d), lambda i: (i, 0)),
        compiler_params=_compiler_params("parallel"),
    )(x2, w)


def attention_block(q, kv, bias, addmask, wo, bo, residual, *, heads, head_dim, scale):
    B, Nq, inner = q.shape
    Nk = kv.shape[1]
    D = residual.shape[-1]
    has_bias = bias is not None
    kern = functools.partial(_attn_out_res_kernel, heads=heads, head_dim=head_dim,
                             scale=scale, has_bias=has_bias)
    in_specs = [pl.BlockSpec((1, Nq, inner), lambda b: (b, 0, 0)),
                pl.BlockSpec((1, Nk, 2 * inner), lambda b: (b, 0, 0))]
    args = [q, kv]
    if has_bias:
        in_specs.append(pl.BlockSpec((heads, Nq, Nk), lambda b: (0, 0, 0)))
        args.append(bias)
    in_specs += [pl.BlockSpec((1, 1, Nk), lambda b: (b, 0, 0)),
                 pl.BlockSpec((inner, D), lambda b: (0, 0)),
                 pl.BlockSpec((1, D), lambda b: (0, 0)),
                 pl.BlockSpec((1, Nq, D), lambda b: (b, 0, 0))]
    args += [addmask, wo, bo.reshape(1, D), residual]
    return pl.pallas_call(
        kern,
        out_shape=jax.ShapeDtypeStruct((B, Nq, D), jnp.float32),
        grid=(B,),
        in_specs=in_specs,
        out_specs=pl.BlockSpec((1, Nq, D), lambda b: (b, 0, 0)),
        compiler_params=_compiler_params("parallel"),
    )(*args)


def silu_time(t, wsc, bsc, wsh, bsh):
    Bt, T = t.shape
    D = wsc.shape[1]
    tm = _row_tile(Bt)
    return pl.pallas_call(
        _silu_time_kernel,
        out_shape=(jax.ShapeDtypeStruct((Bt, D), jnp.float32),
                   jax.ShapeDtypeStruct((Bt, D), jnp.float32)),
        grid=(Bt // tm,),
        in_specs=[pl.BlockSpec((tm, T), lambda i: (i, 0)),
                  pl.BlockSpec((T, D), lambda i: (0, 0)),
                  pl.BlockSpec((1, D), lambda i: (0, 0)),
                  pl.BlockSpec((T, D), lambda i: (0, 0)),
                  pl.BlockSpec((1, D), lambda i: (0, 0))],
        out_specs=(pl.BlockSpec((tm, D), lambda i: (i, 0)),
                   pl.BlockSpec((tm, D), lambda i: (i, 0))),
        compiler_params=_compiler_params("parallel"),
    )(t, wsc, bsc.reshape(1, D), wsh, bsh.reshape(1, D))


def ln_ff_time(x, g, b, w1, b1, w2, b2, sc, sh):
    B, N, D = x.shape
    Hd = w1.shape[1]
    tn = _row_tile(N)
    return pl.pallas_call(
        _ln_ff_time_kernel,
        out_shape=jax.ShapeDtypeStruct((B, N, D), jnp.float32),
        grid=(B, N // tn),
        in_specs=[pl.BlockSpec((1, tn, D), lambda bi, j: (bi, j, 0)),
                  pl.BlockSpec((1, D), lambda bi, j: (0, 0)),
                  pl.BlockSpec((1, D), lambda bi, j: (0, 0)),
                  pl.BlockSpec((D, Hd), lambda bi, j: (0, 0)),
                  pl.BlockSpec((1, Hd), lambda bi, j: (0, 0)),
                  pl.BlockSpec((Hd, D), lambda bi, j: (0, 0)),
                  pl.BlockSpec((1, D), lambda bi, j: (0, 0)),
                  pl.BlockSpec((1, 1, D), lambda bi, j: (bi, 0, 0)),
                  pl.BlockSpec((1, 1, D), lambda bi, j: (bi, 0, 0))],
        out_specs=pl.BlockSpec((1, tn, D), lambda bi, j: (bi, j, 0)),
        compiler_params=_compiler_params("parallel", "parallel"),
    )(x, g.reshape(1, D), b.reshape(1, D), w1, b1.reshape(1, Hd),
      w2, b2.reshape(1, D), sc, sh)


# ----------------------- relative position bias (glue) -----------------------

def _relative_position_bucket(rel_pos, num_buckets=32, max_distance=128):
    # non-causal T5-style bucketing (integer glue, kept in plain JAX)
    num_buckets = num_buckets // 2
    n = -rel_pos
    ret = (n < 0).astype(jnp.int32) * num_buckets
    n = jnp.abs(n)
    max_exact = num_buckets // 2
    is_small = n < max_exact
    n_safe = jnp.maximum(n, 1).astype(jnp.float32)
    val_if_large = max_exact + (
        jnp.log(n_safe / max_exact) / math.log(max_distance / max_exact)
        * (num_buckets - max_exact)
    ).astype(jnp.int32)
    val_if_large = jnp.minimum(val_if_large, num_buckets - 1)
    return ret + jnp.where(is_small, n, val_if_large)


def relative_position_bias(emb_table, n_q, n_k, scale):
    q_pos = jnp.arange(n_q)
    k_pos = jnp.arange(n_k)
    rel = k_pos[None, :] - q_pos[:, None]
    buckets = _relative_position_bucket(rel)          # (n_q, n_k) int
    vals = emb_table[buckets]                         # (n_q, n_k, H)
    return jnp.transpose(vals, (2, 0, 1)) * scale     # (H, n_q, n_k)


# --------------------------- parameters & forward ----------------------------

def init_params(key, in_dim, time_emb_dim, heads, head_dim, layer_types, num_buckets=32):
    inner = heads * head_dim
    hidden = in_dim * 4
    wdt = jnp.bfloat16                                  # matmul weights stored bf16
    params = {'layers': []}
    key, sub = jax.random.split(key)
    params['rel_pos_emb'] = 0.02 * jax.random.normal(sub, (num_buckets, heads), jnp.float32)
    for lt in layer_types:
        lp = {}
        key, *ks = jax.random.split(key, 8)
        lp['ln_g'] = jnp.ones((in_dim,), jnp.float32)
        lp['ln_b'] = jnp.zeros((in_dim,), jnp.float32)
        if lt in ('a', 'c'):
            lp['wq'] = (0.02 * jax.random.normal(ks[0], (in_dim, inner), jnp.float32)).astype(wdt)
            wk = 0.02 * jax.random.normal(ks[1], (in_dim, inner), jnp.float32)
            wv = 0.02 * jax.random.normal(ks[2], (in_dim, inner), jnp.float32)
            lp['w_kv'] = jnp.concatenate([wk, wv], axis=1).astype(wdt)
            lp['wo'] = (0.02 * jax.random.normal(ks[3], (inner, in_dim), jnp.float32)).astype(wdt)
            lp['bo'] = jnp.zeros((in_dim,), jnp.float32)
        elif lt == 'f':
            lp['w1'] = (0.02 * jax.random.normal(ks[0], (in_dim, hidden), jnp.float32)).astype(wdt)
            lp['b1'] = jnp.zeros((hidden,), jnp.float32)
            lp['w2'] = (0.02 * jax.random.normal(ks[1], (hidden, in_dim), jnp.float32)).astype(wdt)
            lp['b2'] = jnp.zeros((in_dim,), jnp.float32)
            tw = 0.02 * jax.random.normal(ks[2], (time_emb_dim, 2 * in_dim), jnp.float32)
            lp['time_w_sc'] = tw[:, :in_dim]
            lp['time_w_sh'] = tw[:, in_dim:]
            lp['time_b_sc'] = jnp.zeros((in_dim,), jnp.float32)
            lp['time_b_sh'] = jnp.zeros((in_dim,), jnp.float32)
        else:
            raise ValueError(f'Unknown layer type {lt}')
        params['layers'].append(lp)
    return params


def transformer_layers_forward(params, x, x_mask, time_emb, context, context_mask,
                               layer_types, heads, head_dim):
    # Dropout (attn_dropout / ff_dropout) is eval-mode identity here.
    B, N, D = x.shape
    Nc = context.shape[1]
    inner = heads * head_dim
    scale = head_dim ** -0.5
    rel_bias = relative_position_bias(params['rel_pos_emb'], N, N, head_dim ** 0.5)
    # additive masks (0 keep / -FLT_MAX drop), computed once
    xmask_add = jnp.where(x_mask, 0.0, MASK_NEG).astype(jnp.float32)[:, None, :]
    cmask_add = jnp.where(context_mask, 0.0, MASK_NEG).astype(jnp.float32)[:, None, :]
    x = x.astype(jnp.float32)
    ctx2 = context.astype(jnp.float32).reshape(B * Nc, D)

    for lt, lp in zip(layer_types, params['layers']):
        if lt == 'a':
            q2, kv2 = ln_qkv(x.reshape(B * N, D), lp['ln_g'], lp['ln_b'],
                             lp['wq'], lp['w_kv'])
            x = attention_block(q2.reshape(B, N, inner), kv2.reshape(B, N, 2 * inner),
                                rel_bias, xmask_add, lp['wo'], lp['bo'], x,
                                heads=heads, head_dim=head_dim, scale=scale)
        elif lt == 'c':
            q2 = ln_proj(x.reshape(B * N, D), lp['ln_g'], lp['ln_b'], lp['wq'])
            kv2 = proj(ctx2, lp['w_kv'])                 # raw (un-normed) context, per ref impl
            x = attention_block(q2.reshape(B, N, inner), kv2.reshape(B, Nc, 2 * inner),
                                None, cmask_add, lp['wo'], lp['bo'], x,
                                heads=heads, head_dim=head_dim, scale=scale)
        else:  # 'f'
            sc, sh = silu_time(time_emb, lp['time_w_sc'], lp['time_b_sc'],
                               lp['time_w_sh'], lp['time_b_sh'])
            x = ln_ff_time(x, lp['ln_g'], lp['ln_b'], lp['w1'], lp['b1'],
                           lp['w2'], lp['b2'], sc[:, None, :], sh[:, None, :])
    return x


# ------------------------------------ main -----------------------------------

if __name__ == "__main__":
    B, N, D = 2, 8, 32          # batch, sequence, in_dim
    NC = 8                      # context sequence length
    heads, head_dim = 2, 16
    T = 16                      # time_emb_dim
    depth = 2
    layer_block = ('a', 'c', 'f')
    layer_types = layer_block * depth

    key = jax.random.PRNGKey(0)
    k1, k2, k3, kp = jax.random.split(key, 4)
    x = jax.random.normal(k1, (B, N, D), jnp.float32)
    context = jax.random.normal(k2, (B, NC, D), jnp.float32)
    time_emb = jax.random.normal(k3, (B, T), jnp.float32)
    x_mask = jnp.ones((B, N), jnp.bool_).at[1, 6:].set(False)
    context_mask = jnp.ones((B, NC), jnp.bool_).at[0, 5:].set(False)

    params = init_params(kp, D, T, heads, head_dim, layer_types)

    out = transformer_layers_forward(params, x, x_mask, time_emb, context, context_mask,
                                     layer_types, heads, head_dim)
    out = jax.block_until_ready(out)

    assert out.shape == (B, N, D), out.shape
    assert bool(jnp.all(jnp.isfinite(out)))
    print("KERNEL_OK")
</pallas_src>

<mosaic_0001>
module attributes {stable_mosaic.version = 11 : i64} {
  func.func @_ln_qkv_kernel(%arg0: i32, %arg1: memref<16x32xf32, #tpu.memory_space<vmem>>, %arg2: memref<1x32xf32, #tpu.memory_space<vmem>>, %arg3: memref<1x32xf32, #tpu.memory_space<vmem>>, %arg4: memref<32x32xbf16, #tpu.memory_space<vmem>>, %arg5: memref<32x64xbf16, #tpu.memory_space<vmem>>, %arg6: memref<16x32xbf16, #tpu.memory_space<vmem>>, %arg7: memref<16x64xbf16, #tpu.memory_space<vmem>>) attributes {dimension_semantics = [#tpu.dimension_semantics<parallel>], iteration_bounds = array<i64: 1>, scalar_prefetch = 0 : i64, scratch_operands = 0 : i64, tpu.core_type = #tpu.core_type<tc>, window_params = [{transform_indices = @transform_0, window_bounds = array<i64: 16, 32>}, {pipeline_mode = #tpu.pipeline_mode<synchronous>, transform_indices = @transform_1, window_bounds = array<i64: 1, 32>}, {pipeline_mode = #tpu.pipeline_mode<synchronous>, transform_indices = @transform_2, window_bounds = array<i64: 1, 32>}, {pipeline_mode = #tpu.pipeline_mode<synchronous>, transform_indices = @transform_3, window_bounds = array<i64: 32, 32>}, {pipeline_mode = #tpu.pipeline_mode<synchronous>, transform_indices = @transform_4, window_bounds = array<i64: 32, 64>}, {transform_indices = @transform_5, window_bounds = array<i64: 16, 32>}, {transform_indices = @transform_6, window_bounds = array<i64: 16, 64>}]} {
    %c0 = arith.constant 0 : index
    %c0_0 = arith.constant 0 : index
    %0 = vector.load %arg1[%c0, %c0_0] : memref<16x32xf32, #tpu.memory_space<vmem>>, vector<16x32xf32>
    %c0_1 = arith.constant 0 : index
    %c0_2 = arith.constant 0 : index
    %1 = vector.load %arg2[%c0_1, %c0_2] : memref<1x32xf32, #tpu.memory_space<vmem>>, vector<1x32xf32>
    %c0_3 = arith.constant 0 : index
    %c0_4 = arith.constant 0 : index
    %2 = vector.load %arg3[%c0_3, %c0_4] : memref<1x32xf32, #tpu.memory_space<vmem>>, vector<1x32xf32>
    %cst = arith.constant dense<0.000000e+00> : vector<16xf32>
    %3 = vector.multi_reduction <add>, %0, %cst [1] : vector<16x32xf32> to vector<16xf32>
    %4 = vector.shape_cast %3 : vector<16xf32> to vector<16x1xf32>
    %cst_5 = arith.constant 3.200000e+01 : f32
    %5 = vector.broadcast %cst_5 : f32 to vector<16x1xf32>
    %6 = arith.divf %4, %5 : vector<16x1xf32>
    %7 = vector.broadcast %6 : vector<16x1xf32> to vector<16x32xf32>
    %8 = arith.subf %0, %7 : vector<16x32xf32>
    %9 = arith.mulf %8, %8 : vector<16x32xf32>
    %cst_6 = arith.constant dense<0.000000e+00> : vector<16xf32>
    %10 = vector.multi_reduction <add>, %9, %cst_6 [1] : vector<16x32xf32> to vector<16xf32>
    %11 = vector.shape_cast %10 : vector<16xf32> to vector<16x1xf32>
    %cst_7 = arith.constant 3.200000e+01 : f32
    %12 = vector.broadcast %cst_7 : f32 to vector<16x1xf32>
    %13 = arith.divf %11, %12 : vector<16x1xf32>
    %cst_8 = arith.constant 9.99999974E-6 : f32
    %14 = vector.broadcast %cst_8 : f32 to vector<16x1xf32>
    %15 = arith.addf %13, %14 : vector<16x1xf32>
    %16 = math.rsqrt %15 : vector<16x1xf32>
    %17 = vector.broadcast %16 : vector<16x1xf32> to vector<16x32xf32>
    %18 = arith.mulf %8, %17 : vector<16x32xf32>
    %19 = vector.broadcast %1 : vector<1x32xf32> to vector<16x32xf32>
    %20 = arith.mulf %18, %19 : vector<16x32xf32>
    %21 = vector.broadcast %2 : vector<1x32xf32> to vector<16x32xf32>
    %22 = arith.addf %20, %21 : vector<16x32xf32>
    %23 = arith.truncf %22 : vector<16x32xf32> to vector<16x32xbf16>
    %c0_9 = arith.constant 0 : index
    %c0_10 = arith.constant 0 : index
    %24 = vector.load %arg4[%c0_9, %c0_10] : memref<32x32xbf16, #tpu.memory_space<vmem>>, vector<32x32xbf16>
    %cst_11 = arith.constant dense<0.000000e+00> : vector<16x32xf32>
    %25 = tpu.matmul %23, %24, %cst_11 {dimension_numbers = #tpu.dot_dimension_numbers<[1], [0], [0], [1], [0, 0, 1, 1], [], []>} : vector<16x32xbf16>, vector<32x32xbf16>, vector<16x32xf32> -> vector<16x32xf32>
    %26 = arith.truncf %25 : vector<16x32xf32> to vector<16x32xbf16>
    %c0_12 = arith.constant 0 : index
    %c0_13 = arith.constant 0 : index
    %27 = vector.load %arg6[%c0_12, %c0_13] : memref<16x32xbf16, #tpu.memory_space<vmem>>, vector<16x32xbf16>
    tpu.vector_store %arg6[%c0_12, %c0_13], %26 {strides = array<i32>} : memref<16x32xbf16, #tpu.memory_space<vmem>>, vector<16x32xbf16>,
    %c0_14 = arith.constant 0 : index
    %c0_15 = arith.constant 0 : index
    %28 = vector.load %arg5[%c0_14, %c0_15] : memref<32x64xbf16, #tpu.memory_space<vmem>>, vector<32x64xbf16>
    %cst_16 = arith.constant dense<0.000000e+00> : vector<16x64xf32>
    %29 = tpu.matmul %23, %28, %cst_16 {dimension_numbers = #tpu.dot_dimension_numbers<[1], [0], [0], [1], [0, 0, 1, 1], [], []>} : vector<16x32xbf16>, vector<32x64xbf16>, vector<16x64xf32> -> vector<16x64xf32>
    %30 = arith.truncf %29 : vector<16x64xf32> to vector<16x64xbf16>
    %c0_17 = arith.constant 0 : index
    %c0_18 = arith.constant 0 : index
    %31 = vector.load %arg7[%c0_17, %c0_18] : memref<16x64xbf16, #tpu.memory_space<vmem>>, vector<16x64xbf16>
    tpu.vector_store %arg7[%c0_17, %c0_18], %30 {strides = array<i32>} : memref<16x64xbf16, #tpu.memory_space<vmem>>, vector<16x64xbf16>,
    return
  }
  func.func @transform_0(%arg0: i32) -> (i32, i32) {
    %c0_i32 = arith.constant 0 : i32
    %c0_i32_0 = arith.constant 0 : i32
    return %arg0, %c0_i32 : i32, i32
  }
  func.func @transform_1(%arg0: i32) -> (i32, i32) {
    %c0_i32 = arith.constant 0 : i32
    %c0_i32_0 = arith.constant 0 : i32
    %c0_i32_1 = arith.constant 0 : i32
    return %c0_i32, %c0_i32_0 : i32, i32
  }
  func.func @transform_2(%arg0: i32) -> (i32, i32) {
    %c0_i32 = arith.constant 0 : i32
    %c0_i32_0 = arith.constant 0 : i32
    %c0_i32_1 = arith.constant 0 : i32
    return %c0_i32, %c0_i32_0 : i32, i32
  }
  func.func @transform_3(%arg0: i32) -> (i32, i32) {
    %c0_i32 = arith.constant 0 : i32
    %c0_i32_0 = arith.constant 0 : i32
    %c0_i32_1 = arith.constant 0 : i32
    return %c0_i32, %c0_i32_0 : i32, i32
  }
  func.func @transform_4(%arg0: i32) -> (i32, i32) {
    %c0_i32 = arith.constant 0 : i32
    %c0_i32_0 = arith.constant 0 : i32
    %c0_i32_1 = arith.constant 0 : i32
    return %c0_i32, %c0_i32_0 : i32, i32
  }
  func.func @transform_5(%arg0: i32) -> (i32, i32) {
    %c0_i32 = arith.constant 0 : i32
    %c0_i32_0 = arith.constant 0 : i32
    return %arg0, %c0_i32 : i32, i32
  }
  func.func @transform_6(%arg0: i32) -> (i32, i32) {
    %c0_i32 = arith.constant 0 : i32
    %c0_i32_0 = arith.constant 0 : i32
    return %arg0, %c0_i32 : i32, i32
  }
}

</mosaic_0001>

<bundles_post_ra>
// kernel: tpu_custom_call.1
= control target key start
LH: loop header
LB: loop body
LE: loop exit
PB: predicated region body
PF: predicated region fallthrough
CT: control target
= control target key end

     0   :  { %12 = vsyncpa [#allocation3], 0  ;;  %s703_s0 = inlined_call_operand.hbm [shape: f32[16,32], index: 0, kind: input, shape index: {}]   ;;  %s704_s1 = inlined_call_operand.hbm [shape: f32[1,32], index: 1, kind: input, shape index: {}]   ;;  %s705_s2 = inlined_call_operand.hbm [shape: f32[1,32], index: 2, kind: input, shape index: {}]   ;;  %s706_s3 = inlined_call_operand.hbm [shape: bf16[32,32], index: 3, kind: input, shape index: {}]   ;;  %s707_s4 = inlined_call_operand.hbm [shape: bf16[32,64], index: 4, kind: input, shape index: {}]   ;;  %s708_s5 = inlined_call_operand.hbm [shape: bf16[16,32], index: 5, kind: output, shape index: {0}]   ;;  %s709_s6 = inlined_call_operand.hbm [shape: bf16[16,64], index: 6, kind: output, shape index: {1}]  }
   0x1   :  { %13 = vsyncpa [#allocation6], 0 }
   0x2   :  { %14 = vsyncpa [#allocation9], 0 }
   0x3   :  { %15 = vsyncpa [#allocation4], 0 }
   0x4   :  { %16 = vsyncpa [#allocation13], 0  ;;  %s535_s21 = smov [#allocation5]   ;;  %s536_s23 = smov [#allocation8]  }
   0x5   :  { %s35_s22 = sshll.u32 %s535_s21, 4  ;;  %s54_s24 = sshll.u32 %s536_s23, 4  ;;  %s36_s22 = int_to_ptr.vmem [resolvable:$true] %s35_s22  ;;  %s583_s24 = int_to_ptr.vmem [resolvable:$true] %s54_s24 }
   0x6   :  { %s371_s27 = scalar_lea.hbm %s704_s1, 16 }
   0x7   :  { %p372_p0 = scmp.ne.s32.totalorder %s704_s1, %s371_s27  ;;  %p375_p1 = scmp.lt.u32.totalorder %s371_s27, %s704_s1 }
   0x9   :  { %p377_p2 = pnand %p375_p1, %p372_p0 }
   0xb   :  { %380 = shalt.err (!%p377_p2)
}
   0xc   :  { %s381_s8 = scalar_lea.vmem %s36_s22, 16  ;;  %s385_s9 = scalar_lea.vmem %s36_s22, 32 }
   0xd   :  { %p382_p3 = scmp.ne.s32.totalorder %s36_s22, %s381_s8  ;;  %p386_p4 = scmp.lt.s32.totalorder %s36_s22, %s36_s22 }
   0xe   :  { %p387_p5 = scmp.lt.s32.totalorder %s385_s9, %s381_s8 }
  0x10   :  { %p388_p6 = por %p387_p5, %p386_p4 }
  0x12   :  { %p389_p7 = pnand %p388_p6, %p382_p3 }
  0x14   :  { %392 = shalt.err (!%p389_p7)
}
  0x15   :  { %38 = dma.hbm_to_vmem [thread:$0]  %s704_s1, 16, %s36_s22, [#allocation6]  }
  0x16   :  { %s393_s14 = scalar_lea.hbm %s706_s3, 256 }
  0x17   :  { %p394_p8 = scmp.ne.s32.totalorder %s706_s3, %s393_s14  ;;  %p397_p9 = scmp.lt.u32.totalorder %s393_s14, %s706_s3 }
  0x19   :  { %p399_p10 = pnand %p397_p9, %p394_p8 }
  0x1b   :  { %402 = shalt.err (!%p399_p10)
}
  0x1c   :  { %s403_s19 = scalar_lea.vmem %s583_s24, 256  ;;  %p408_p12 = scmp.lt.s32.totalorder %s583_s24, %s583_s24 }
  0x1d   :  { %p404_p11 = scmp.ne.s32.totalorder %s583_s24, %s403_s19  ;;  %p409_p13 = scmp.lt.s32.totalorder %s403_s19, %s403_s19 }
  0x1f   :  { %p410_p0 = por %p409_p13, %p408_p12 }
  0x21   :  { %p411_p1 = pnand %p410_p0, %p404_p11 }
  0x23   :  { %414 = shalt.err (!%p411_p1)
}
  0x24   :  { %s537_s1 = smov 64   ;;  %s538_s20 = smov 4  }
  0x25   :  { %60 = dma.hbm_to_vmem [thread:$0]  %s706_s3, 256, %s583_s24, [#allocation9], %s537_s1, %s537_s1, %s538_s20  }
  0x26   :  { %s539_s23 = smov [#allocation2]   ;;  %s415_s28 = scalar_lea.hbm %s703_s0, 256 }
  0x27   :  { %s22_s25 = sshll.u32 %s539_s23, 4  ;;  %p416_p2 = scmp.ne.s32.totalorder %s703_s0, %s415_s28  ;;  %s23_s25 = int_to_ptr.vmem [resolvable:$true] %s22_s25 }
  0x28   :  { %p419_p3 = scmp.lt.u32.totalorder %s415_s28, %s703_s0 }
  0x2a   :  { %p421_p4 = pnand %p419_p3, %p416_p2 }
  0x2c   :  { %424 = shalt.err (!%p421_p4)
}
  0x2d   :  { %s425_s9 = scalar_lea.vmem %s23_s25, 256  ;;  %p430_p6 = scmp.lt.s32.totalorder %s23_s25, %s23_s25 }
  0x2e   :  { %p426_p5 = scmp.ne.s32.totalorder %s23_s25, %s425_s9  ;;  %p431_p7 = scmp.lt.s32.totalorder %s425_s9, %s425_s9 }
  0x30   :  { %p432_p8 = por %p431_p7, %p430_p6 }
  0x32   :  { %p433_p9 = pnand %p432_p8, %p426_p5 }
  0x34   :  { %436 = shalt.err (!%p433_p9)
}
  0x35   :  { %s540_s3 = smov 128   ;;  %s541_s24 = smov 8  }
  0x36   :  { %28 = dma.hbm_to_vmem [thread:$0]  %s703_s0, 256, %s23_s25, [#allocation3], %s540_s3, %s540_s3, %s541_s24  }
  0x37   :  { %s542_s12 = smov [#allocation7]   ;;  %s543_s14 = smov [#allocation10]  }
  0x38   :  { %s45_s13 = sshll.u32 %s542_s12, 4  ;;  %s66_s15 = sshll.u32 %s543_s14, 4  ;;  %s46_s13 = int_to_ptr.vmem [resolvable:$true] %s45_s13  ;;  %s67_s15 = int_to_ptr.vmem [resolvable:$true] %s66_s15 }
  0x39   :  { %s437_s18 = scalar_lea.hbm %s705_s2, 16 }
  0x3a   :  { %p438_p10 = scmp.ne.s32.totalorder %s705_s2, %s437_s18  ;;  %p441_p11 = scmp.lt.u32.totalorder %s437_s18, %s705_s2 }
  0x3c   :  { %p443_p12 = pnand %p441_p11, %p438_p10 }
  0x3e   :  { %446 = shalt.err (!%p443_p12)
}
  0x3f   :  { %s447_s0 = scalar_lea.vmem %s46_s13, 16  ;;  %s451_s25 = scalar_lea.vmem %s46_s13, 32 }
  0x40   :  { %p448_p13 = scmp.ne.s32.totalorder %s46_s13, %s447_s0  ;;  %p452_p0 = scmp.lt.s32.totalorder %s46_s13, %s46_s13 }
  0x41   :  { %p453_p1 = scmp.lt.s32.totalorder %s451_s25, %s447_s0 }
  0x43   :  { %p454_p2 = por %p453_p1, %p452_p0 }
  0x45   :  { %p455_p3 = pnand %p454_p2, %p448_p13 }
  0x47   :  { %458 = shalt.err (!%p455_p3)
}
  0x48   :  { %48 = dma.hbm_to_vmem [thread:$0]  %s705_s2, 16, %s46_s13, [#allocation6]  }
  0x49   :  { %s459_s30 = scalar_lea.hbm %s707_s4, 256 }
  0x4a   :  { %p460_p4 = scmp.ne.s32.totalorder %s707_s4, %s459_s30  ;;  %p463_p5 = scmp.lt.u32.totalorder %s459_s30, %s707_s4 }
  0x4c   :  { %p465_p6 = pnand %p463_p5, %p460_p4 }
  0x4e   :  { %468 = shalt.err (!%p465_p6)
}
  0x4f   :  { %s469_s24 = scalar_lea.vmem %s67_s15, 256  ;;  %p474_p8 = scmp.lt.s32.totalorder %s67_s15, %s67_s15 }
  0x50   :  { %p470_p7 = scmp.ne.s32.totalorder %s67_s15, %s469_s24  ;;  %p475_p9 = scmp.lt.s32.totalorder %s469_s24, %s469_s24 }
  0x52   :  { %p476_p10 = por %p475_p9, %p474_p8 }
  0x54   :  { %p477_p11 = pnand %p476_p10, %p470_p7 }
  0x56   :  { %480 = shalt.err (!%p477_p11)
}
  0x57   :  { %72 = dma.hbm_to_vmem [thread:$0]  %s707_s4, 256, %s67_s15, [#allocation9], %s537_s1, %s537_s1, %s538_s20  }
  0x58   :  { %525 = dma.done.wait [#allocation3], 256  }
  0x59   :  { %526 = vsyncadd [#allocation3], 4294967040 }
  0x5a   :  { %527 = dma.done.wait [#allocation6], 32  }
  0x5b   :  { %528 = vsyncadd [#allocation6], 4294967264 }
  0x5c   :  { %529 = dma.done.wait [#allocation9], 512  }
  0x5d   :  { %530 = vsyncadd [#allocation9], 4294966784  ;;  %vm93_vm0 = vcmask 261120   ;;  %v89_v0 = vld [vmem:[#allocation2] sm:$0xff]  ;;  %v90_v1 = vld [vmem:[#allocation2 + $0x8] sm:$0xff]  ;;  %v544_v16 = vmov 0.0  }
  0x5e   :  { %v94_v2 = vsel %vm93_vm0, %v89_v0, 0.0  ;;  %v97_v3 = vsel %vm93_vm0, %v90_v1, 0.0  ;;  %v363_v14 = vld [vmem:[#allocation8] sm:$0xff]   ;;  %v364_v15 = vld [vmem:[#allocation10] sm:$0xff]   ;;  %334 = vmatprep.subr.bf16.mxu0 %v544_v16  ;;  %342 = vmatprep.subr.bf16.mxu1 %v544_v16  ;;  %v365_v17 = vld [vmem:[#allocation8 + $0x8] sm:$0xff]   ;;  %vm545_vm1 = vmmov 0  }
  0x5f   :  { %95 = vadd.xlane.f32.xlu0 %v94_v2  ;;  %335 = vmatpush3.bf16.msra.mxu0 %v363_v14  ;;  %v366_v18 = vld [vmem:[#allocation10 + $0x8] sm:$0xff]   ;;  %vm206_vm2 = vcmask 257024   ;;  %s546_s4 = smov [#allocation11]   ;;  %vm274_vm3 = vcmask 519168   ;;  %s547_s12 = smov [#allocation12]  }
  0x60   :  { %343 = vmatpush3.bf16.msra.mxu1 %v364_v15  ;;  %336 = vmatprep.subr.bf16.mxu0 %v544_v16  ;;  %v312_v27 = vld [vmem:[#allocation5] ss:$0 sm:$0xff]  ;;  %v313_v31 = vld [vmem:[#allocation7] ss:$0 sm:$0xff]  ;;  %s282_s11 = sshll.u32 %s546_s4, 4  ;;  %s294_s13 = sshll.u32 %s547_s12, 4  ;;  %s283_s11 = int_to_ptr.vmem [resolvable:$true] %s282_s11  ;;  %s664_s13 = int_to_ptr.vmem [resolvable:$true] %s294_s13 }
  0x61   :  { %344 = vmatprep.subr.bf16.mxu1 %v544_v16  ;;  %338 = vmatprep.mubr.msk.bf16.mxu0 %vm545_vm1, %v544_v16  ;;  %s481_s14 = scalar_lea.vmem %s283_s11, 128  ;;  %p486_p13 = scmp.lt.s32.totalorder %s283_s11, %s283_s11 }
  0x62   :  { %346 = vmatprep.mubr.msk.bf16.mxu1 %vm545_vm1, %v544_v16  ;;  %p482_p12 = scmp.ne.s32.totalorder %s283_s11, %s481_s14  ;;  %p487_p0 = scmp.lt.s32.totalorder %s481_s14, %s481_s14 }
  0x63   :  { %98 = vadd.xlane.f32.xlu0 %v97_v3  ;;  %337 = vmatpush3.bf16.msra.mxu0 %v365_v17 }
  0x64   :  { %345 = vmatpush3.bf16.msra.mxu1 %v366_v18  ;;  %p488_p1 = por %p487_p0, %p486_p13 }
  0x66   :  { %p489_p2 = pnand %p488_p1, %p482_p12 }
  0xec   :  { %v96_v4 = vpop.xlane.xlu0 %95 }
  0xed   :  { %v101_v5 = vmul.f32 0.03125, %v96_v4 }
  0xef   :  { %v103_v6 = vsub.f32 %v89_v0, %v101_v5 }
  0xf0   :  { %v99_v7 = vpop.xlane.xlu0 %98 }
  0xf1   :  { %v102_v8 = vmul.f32 0.03125, %v99_v7  ;;  %v105_v9 = vmul.f32 %v103_v6, %v103_v6 }
  0xf3   :  { %v104_v10 = vsub.f32 %v90_v1, %v102_v8  ;;  %v107_v11 = vsel %vm93_vm0, %v105_v9, 0.0 }
  0xf4   :  { %108 = vadd.xlane.f32.xlu1 %v107_v11 }
  0xf5   :  { %v106_v12 = vmul.f32 %v104_v10, %v104_v10 }
  0xf7   :  { %v110_v13 = vsel %vm93_vm0, %v106_v12, 0.0 }
  0xf8   :  { %111 = vadd.xlane.f32.xlu1 %v110_v13 }
 0x181   :  { %v109_v19 = vpop.xlane.xlu1 %108 }
 0x182   :  { %v113_v20 = vmul.f32 0.03125, %v109_v19 }
 0x184   :  { %v115_v21 = vadd.f32 1e-05, %v113_v20 }
 0x185   :  { %v112_v22 = vpop.xlane.xlu1 %111 }
 0x186   :  { %367 = vrsqrt.f32 %v115_v21  ;;  %v114_v23 = vmul.f32 0.03125, %v112_v22 }
 0x188   :  { %v116_v24 = vadd.f32 1e-05, %v114_v23 }
 0x18a   :  { %369 = vrsqrt.f32 %v116_v24 }
 0x190   :  { %v368_v25 = vpop.eup %367 }
 0x191   :  { %v119_v26 = vmul.f32 %v368_v25, %v103_v6 }
 0x193   :  { %v127_v30 = vmul.f32 %v312_v27, %v119_v26 }
 0x194   :  { %v370_v28 = vpop.eup %369 }
 0x195   :  { %v120_v29 = vmul.f32 %v370_v28, %v104_v10  ;;  %v135_v33 = vadd.f32 %v313_v31, %v127_v30 }
 0x197   :  { %v128_v32 = vmul.f32 %v312_v27, %v120_v29 }
 0x199   :  { %v136_v34 = vadd.f32 %v313_v31, %v128_v32 }
 0x19b   :  { %v137_v35 = vpack.c.bf16 %v136_v34, %v135_v33 }
 0x19d   :  { %339 = vmatmul.mubr.msk.bf16.vlgmr.msra.gmra.mrb[0].mxu0 %vm93_vm0, %v137_v35  ;;  %347 = vmatmul.mubr.msk.bf16.vlgmr.msra.gmra.mrb[0].mxu1 %vm93_vm0, %v137_v35 }
 0x270   :  { %v191_v36 = vpop.f32.mrb[0].mxu0  ;;  %v259_v37 = vpop.f32.mrb[0].mxu1 }
 0x271   :  { %v324_v38 = vpack.c.bf16 %v191_v36, %v191_v36  ;;  %v326_v39 = vpack.c.bf16 %v259_v37, %v259_v37  ;;  %v340_v40 = vpop.f32.mrb[1].mxu0  ;;  %v348_v41 = vpop.f32.mrb[1].mxu1 }
 0x272   :  { %v194_v42 = vpop.f32.mrb[2].mxu0  ;;  %v262_v43 = vpop.f32.mrb[2].mxu1 }
 0x273   :  { %v325_v44 = vpack.c.bf16 %v194_v42, %v194_v42  ;;  %v327_v45 = vpack.c.bf16 %v262_v43, %v262_v43  ;;  %v341_v46 = vpop.f32.mrb[3].mxu0  ;;  %v349_v47 = vpop.f32.mrb[3].mxu1  ;;  %207 = vst.msk [vmem:[#allocation11] sm:$0xf] %vm206_vm2, %v324_v38 }
 0x274   :  { %275 = vst.msk [vmem:[#allocation12] sm:$0xf] %vm274_vm3, %v326_v39 }
 0x275   :  { %208 = vst.msk [vmem:[#allocation11 + $0x4] sm:$0xf] %vm206_vm2, %v325_v44 }
 0x276   :  { %276 = vst.msk [vmem:[#allocation12 + $0x4] sm:$0xf] %vm274_vm3, %v327_v45 }
 0x277   :  { %492 = shalt.err (!%p489_p2)
}
 0x278   :  { %s493_s17 = scalar_lea.hbm %s708_s5, 128 }
 0x279   :  { %p494_p3 = scmp.ne.s32.totalorder %s708_s5, %s493_s17  ;;  %p497_p4 = scmp.lt.u32.totalorder %s493_s17, %s708_s5 }
 0x27b   :  { %p499_p5 = pnand %p497_p4, %p494_p3 }
 0x27d   :  { %502 = shalt.err (!%p499_p5)
}
 0x27e   :  { %288 = dma.vmem_to_hbm [thread:$0]  %s283_s11, 128, %s708_s5, [#allocation4], %s537_s1, %s537_s1, %s538_s20  }
 0x27f   :  { %s503_s25 = scalar_lea.vmem %s664_s13, 128  ;;  %p508_p7 = scmp.lt.s32.totalorder %s664_s13, %s664_s13 }
 0x280   :  { %p504_p6 = scmp.ne.s32.totalorder %s664_s13, %s503_s25  ;;  %p509_p8 = scmp.lt.s32.totalorder %s503_s25, %s503_s25 }
 0x282   :  { %p510_p9 = por %p509_p8, %p508_p7 }
 0x284   :  { %p511_p10 = pnand %p510_p9, %p504_p6 }
 0x286   :  { %514 = shalt.err (!%p511_p10)
}
 0x287   :  { %s515_s28 = scalar_lea.hbm %s709_s6, 128 }
 0x288   :  { %p516_p11 = scmp.ne.s32.totalorder %s709_s6, %s515_s28  ;;  %p519_p12 = scmp.lt.u32.totalorder %s515_s28, %s709_s6 }
 0x28a   :  { %p521_p13 = pnand %p519_p12, %p516_p11 }
 0x28c   :  { %524 = shalt.err (!%p521_p13)
}
 0x28d   :  { %300 = dma.vmem_to_hbm [thread:$0]  %s664_s13, 128, %s709_s6, [#allocation13], %s537_s1, %s537_s1, %s538_s20  }
 0x28e   :  { %531 = dma.done.wait [#allocation4], 128  }
 0x28f   :  { %532 = vsyncadd [#allocation4], 4294967168 }
 0x290   :  { %533 = dma.done.wait [#allocation13], 128  }
 0x291   :  { %534 = vsyncadd [#allocation13], 4294967168 }
 0x292   :  { %307 = vsyncpa [#allocation3], 1 }
 0x293   :  { %308 = vsyncpa [#allocation6], 1 }
 0x294   :  { %309 = vsyncpa [#allocation9], 1 }
 0x295   :  { %310 = vsyncpa [#allocation4], 1 }
 0x296   :  { %311 = vsyncpa [#allocation13], 1 }

</bundles_post_ra>
